<compile_context>
chip_gen: v7x
topology: tpu7x:2x2x1
jax: 0.10.0
libtpu: 0.0.40
codegen_flags: <defaults>
</compile_context>

<pallas_src>
import functools

import jax
import jax.numpy as jnp
from jax.experimental import pallas as pl
from jax.experimental.pallas import tpu as pltpu


def _cdiv(a, b):
    return -(-a // b)


def _round_up(a, m):
    return _cdiv(a, m) * m


def fdd_kernel(x_ref, wcat_ref, bcat_ref, wh_ref, bh_ref, yl_ref, yh_ref):
    # x_ref: (4C, tsp); rows are [a | b | c | d] x C (2x2-subsampled planes),
    # columns are output pixels (lane axis).
    x = x_ref[...]

    # One matmul for both branches that read x:
    #   rows [0, out_ch)        -> LL branch output (Haar LL + convL, BN folded)
    #   rows [out_ch, out_ch+C) -> H-branch intermediate t (Haar H1..H3 + conv1)
    u = jnp.dot(wcat_ref[...], x, preferred_element_type=jnp.float32)
    u = jnp.maximum(u + bcat_ref[...], 0.0)

    out_ch = yl_ref.shape[0]
    yl_ref[...] = u[:out_ch, :].astype(yl_ref.dtype)

    # H branch output: convH applied to t.  wh_ref is zero-padded over the yl
    # rows of u, so the whole fused activation can be fed to the MXU directly.
    yh = jnp.dot(wh_ref[...], u, preferred_element_type=jnp.float32)
    yh_ref[...] = jnp.maximum(yh + bh_ref[...], 0.0).astype(yh_ref.dtype)


@functools.partial(jax.jit, static_argnames=("tm", "vmem_limit_mb"))
def fdd_forward(x, folded, *, tm=32768, vmem_limit_mb=40):
    """x: NCHW float32.  Returns (yL, yH), each (N, out_ch, H/2, W/2)."""
    N, C, H, W = x.shape
    assert H % 2 == 0 and W % 2 == 0, "Haar DWT (J=1) expects even H and W"
    assert tm % 128 == 0, "lane tile cap must be a multiple of 128"
    H2, W2 = H // 2, W // 2
    S = H2 * W2
    C4 = 4 * C
    out_ch = folded["wh"].shape[0]

    # Single layout transform: NCHW -> (N, 4C, S).  Rows of the 4C axis are
    # the four 2x2 pixel planes a=x[2i,2j], b=x[2i,2j+1], c=x[2i+1,2j],
    # d=x[2i+1,2j+1] of each channel; S is flattened (H/2, W/2).
    # allow_input_fusion (below) lets XLA fuse this transpose into the pallas
    # operand DMA instead of a separate HBM round trip.
    # TODO(synk): a fully in-kernel 2x2 de-interleave (strided DMA of NCHW row
    # bands) would remove the transform even when XLA declines to fuse it.
    xr = x.reshape(N, C, H2, 2, W2, 2)
    x4 = xr.transpose(0, 3, 5, 1, 2, 4).reshape(N, C4, S)

    # ---- spatial (lane) tile size from a VMEM byte budget ------------------
    # f32 words resident per lane: x (double-buffered) + loaded x value,
    # two outputs double-buffered, fused activation u, yh temporary.
    words_per_lane = 3 * C4 + 4 * out_ch + (C + out_ch) + out_ch
    budget_bytes = int(0.7 * vmem_limit_mb * 1024 * 1024)
    cap = budget_bytes // (4 * words_per_lane)
    cap = max(128, min(tm, (cap // 128) * 128))

    if S <= cap:
        tsp = S
        if N < 2 and S >= 256:
            # Guarantee >= 2 grid steps so both v7x TensorCores get work.
            tsp = _round_up(_cdiv(S, 2), 128)
    else:
        # Balanced tiles: avoid a tiny mostly-masked remainder tile.
        n_tiles = _cdiv(S, cap)
        tsp = _round_up(_cdiv(S, n_tiles), 128)
    n_s = pl.cdiv(S, tsp)

    def full_spec(arr):
        return pl.BlockSpec(arr.shape, lambda n, s: (0,) * arr.ndim)

    x_spec = pl.BlockSpec((None, C4, tsp), lambda n, s: (n, 0, s))
    y_spec = pl.BlockSpec((None, out_ch, tsp), lambda n, s: (n, 0, s))

    p = folded
    yl, yh = pl.pallas_call(
        fdd_kernel,
        out_shape=(jax.ShapeDtypeStruct((N, out_ch, S), jnp.float32),
                   jax.ShapeDtypeStruct((N, out_ch, S), jnp.float32)),
        grid_spec=pltpu.PrefetchScalarGridSpec(
            num_scalar_prefetch=0,
            grid=(N, n_s),
            in_specs=[x_spec,
                      full_spec(p["wcat"]), full_spec(p["bcat"]),
                      full_spec(p["wh"]), full_spec(p["bh"])],
            out_specs=[y_spec, y_spec],
        ),
        compiler_params=pltpu.CompilerParams(
            dimension_semantics=("parallel", "parallel"),
            vmem_limit_bytes=vmem_limit_mb * 1024 * 1024,
            allow_input_fusion=[True, False, False, False, False]),
    )(x4, p["wcat"], p["bcat"], p["wh"], p["bh"])

    # (N, out_ch, S) -> (N, out_ch, H/2, W/2): free reshape, no transpose.
    return yl.reshape(N, out_ch, H2, W2), yh.reshape(N, out_ch, H2, W2)


def make_params(key, in_ch, out_ch):
    """Synthetic conv + BN parameters (PyTorch orientation, inference stats)."""
    def conv_bn(k, cin, cout):
        kw, kb, kg, kbe, km, kv = jax.random.split(k, 6)
        w = jax.random.normal(kw, (cout, cin), jnp.float32) / jnp.sqrt(float(cin))
        cb = 0.1 * jax.random.normal(kb, (cout,), jnp.float32)
        gamma = 1.0 + 0.1 * jax.random.normal(kg, (cout,), jnp.float32)
        beta = 0.1 * jax.random.normal(kbe, (cout,), jnp.float32)
        mean = 0.1 * jax.random.normal(km, (cout,), jnp.float32)
        var = 1.0 + 0.1 * jax.random.uniform(kv, (cout,), jnp.float32)
        return (w, cb, gamma, beta, mean, var)

    k1, k2, k3 = jax.random.split(key, 3)
    return {"conv1": conv_bn(k1, 3 * in_ch, in_ch),
            "convL": conv_bn(k2, in_ch, out_ch),
            "convH": conv_bn(k3, in_ch, out_ch)}


def fold_params(raw, in_ch, eps=1e-5):
    """Fold BN (inference), Haar coefficients, and branch merging into weights."""
    def fold_bn(w, cb, gamma, beta, mean, var):
        scale = gamma / jnp.sqrt(var + eps)
        bias = scale * (cb - mean) + beta
        return scale[:, None] * w, bias[:, None]        # scale folded into W

    C = in_ch
    # conv_bn_relu on concat([H1, H2, H3]); split weight by detail band.
    w1, b1 = fold_bn(*raw["conv1"])                     # w1: (C, 3C), scaled
    w1a, w1b, w1c = w1[:, :C], w1[:, C:2 * C], w1[:, 2 * C:]
    # Haar (J=1, 'zero', even H/W) per 2x2 block [[a,b],[c,d]]:
    #   LL=(a+b+c+d)/2, H1=(a+b-c-d)/2, H2=(a-b+c-d)/2, H3=(a-b-c+d)/2.
    # Fold the +-1/2 combination matrix into the 1x1 conv weights so the
    # kernel does a single K=4C matmul per branch on [a|b|c|d].
    w1f = 0.5 * jnp.concatenate(
        [w1a + w1b + w1c, w1a - w1b - w1c, -w1a + w1b - w1c, -w1a - w1b + w1c],
        axis=1)                                         # (C, 4C)

    wl, bl = fold_bn(*raw["convL"])                     # (out, C), scaled
    wlf = 0.5 * jnp.concatenate([wl, wl, wl, wl], axis=1)   # (out, 4C)

    wh, bh = fold_bn(*raw["convH"])                     # (out, C), scaled
    out_ch = wh.shape[0]

    # Merge the two matmuls that consume x: rows [yl | t].
    wcat = jnp.concatenate([wlf, w1f], axis=0)          # (out + C, 4C)
    bcat = jnp.concatenate([bl, b1], axis=0)            # (out + C, 1)
    # Zero-pad convH over the yl rows so it can consume the fused activation.
    whp = jnp.concatenate(
        [jnp.zeros((out_ch, out_ch), wh.dtype), wh], axis=1)  # (out, out + C)

    return {"wcat": wcat, "bcat": bcat, "wh": whp, "bh": bh}


def fdd_reference(x, raw, eps=1e-5):
    """Pure-JAX reference with the unfolded parameters (same semantics)."""
    N, C, H, W = x.shape
    xr = x.reshape(N, C, H // 2, 2, W // 2, 2)
    a = xr[:, :, :, 0, :, 0]
    b = xr[:, :, :, 0, :, 1]
    c = xr[:, :, :, 1, :, 0]
    d = xr[:, :, :, 1, :, 1]
    ll = 0.5 * (a + b + c + d)
    h1 = 0.5 * (a + b - c - d)
    h2 = 0.5 * (a - b + c - d)
    h3 = 0.5 * (a - b - c + d)

    def conv_bn_relu(z, params):
        w, cb, gamma, beta, mean, var = params
        y = jnp.einsum("nchw,kc->nkhw", z, w) + cb[None, :, None, None]
        y = (gamma / jnp.sqrt(var + eps))[None, :, None, None] * (
            y - mean[None, :, None, None]) + beta[None, :, None, None]
        return jnp.maximum(y, 0.0)

    t = conv_bn_relu(jnp.concatenate([h1, h2, h3], axis=1), raw["conv1"])
    yl = conv_bn_relu(ll, raw["convL"])
    yh = conv_bn_relu(t, raw["convH"])
    return yl, yh


if __name__ == "__main__":
    key = jax.random.PRNGKey(0)
    kx, kp = jax.random.split(key)

    N, in_ch, H, W = 2, 4, 16, 16
    out_ch = 8
    x = jax.random.normal(kx, (N, in_ch, H, W), jnp.float32)

    raw = make_params(kp, in_ch, out_ch)
    folded = fold_params(raw, in_ch)

    yl, yh = fdd_forward(x, folded)
    yl, yh = jax.block_until_ready((yl, yh))

    yl_ref, yh_ref = fdd_reference(x, raw)
    assert yl.shape == (N, out_ch, H // 2, W // 2)
    assert yh.shape == (N, out_ch, H // 2, W // 2)
    assert jnp.allclose(yl, yl_ref, atol=1e-5, rtol=1e-5)
    assert jnp.allclose(yh, yh_ref, atol=1e-5, rtol=1e-5)

    print("KERNEL_OK")
</pallas_src>

<mosaic_0001>
module attributes {stable_mosaic.version = 11 : i64} {
  func.func @fdd_kernel(%arg0: i32, %arg1: i32, %arg2: memref<1x16x64xf32, #tpu.memory_space<vmem>>, %arg3: memref<12x16xf32, #tpu.memory_space<vmem>>, %arg4: memref<12x1xf32, #tpu.memory_space<vmem>>, %arg5: memref<8x12xf32, #tpu.memory_space<vmem>>, %arg6: memref<8x1xf32, #tpu.memory_space<vmem>>, %arg7: memref<1x8x64xf32, #tpu.memory_space<vmem>>, %arg8: memref<1x8x64xf32, #tpu.memory_space<vmem>>) attributes {dimension_semantics = [#tpu.dimension_semantics<parallel>, #tpu.dimension_semantics<parallel>], iteration_bounds = array<i64: 2, 1>, scalar_prefetch = 0 : i64, scratch_operands = 0 : i64, tpu.core_type = #tpu.core_type<tc>, window_params = [{transform_indices = @transform_0, window_bounds = array<i64: 1, 16, 64>}, {pipeline_mode = #tpu.pipeline_mode<synchronous>, transform_indices = @transform_1, window_bounds = array<i64: 12, 16>}, {pipeline_mode = #tpu.pipeline_mode<synchronous>, transform_indices = @transform_2, window_bounds = array<i64: 12, 1>}, {pipeline_mode = #tpu.pipeline_mode<synchronous>, transform_indices = @transform_3, window_bounds = array<i64: 8, 12>}, {pipeline_mode = #tpu.pipeline_mode<synchronous>, transform_indices = @transform_4, window_bounds = array<i64: 8, 1>}, {transform_indices = @transform_5, window_bounds = array<i64: 1, 8, 64>}, {transform_indices = @transform_6, window_bounds = array<i64: 1, 8, 64>}]} {
    %c0 = arith.constant 0 : index
    %c0_0 = arith.constant 0 : index
    %c0_1 = arith.constant 0 : index
    %0 = vector.load %arg2[%c0, %c0_0, %c0_1] : memref<1x16x64xf32, #tpu.memory_space<vmem>>, vector<1x16x64xf32>
    %1 = vector.shape_cast %0 : vector<1x16x64xf32> to vector<16x64xf32>
    %c0_2 = arith.constant 0 : index
    %c0_3 = arith.constant 0 : index
    %2 = vector.load %arg3[%c0_2, %c0_3] : memref<12x16xf32, #tpu.memory_space<vmem>>, vector<12x16xf32>
    %cst = arith.constant dense<0.000000e+00> : vector<12x64xf32>
    %3 = tpu.matmul %2, %1, %cst {dimension_numbers = #tpu.dot_dimension_numbers<[1], [0], [0], [1], [0, 0, 1, 1], [], []>} : vector<12x16xf32>, vector<16x64xf32>, vector<12x64xf32> -> vector<12x64xf32>
    %c0_4 = arith.constant 0 : index
    %c0_5 = arith.constant 0 : index
    %4 = vector.load %arg4[%c0_4, %c0_5] : memref<12x1xf32, #tpu.memory_space<vmem>>, vector<12x1xf32>
    %5 = vector.broadcast %4 : vector<12x1xf32> to vector<12x64xf32>
    %6 = arith.addf %3, %5 : vector<12x64xf32>
    %cst_6 = arith.constant 0.000000e+00 : f32
    %7 = vector.broadcast %cst_6 : f32 to vector<12x64xf32>
    %8 = arith.maximumf %6, %7 : vector<12x64xf32>
    %9 = vector.extract_strided_slice %8 {offsets = [0, 0], sizes = [8, 64], strides = [1, 1]} : vector<12x64xf32> to vector<8x64xf32>
    %c0_7 = arith.constant 0 : index
    %c0_8 = arith.constant 0 : index
    %c0_9 = arith.constant 0 : index
    %10 = vector.load %arg7[%c0_7, %c0_8, %c0_9] : memref<1x8x64xf32, #tpu.memory_space<vmem>>, vector<1x8x64xf32>
    %11 = vector.shape_cast %10 : vector<1x8x64xf32> to vector<8x64xf32>
    %12 = vector.shape_cast %9 : vector<8x64xf32> to vector<1x8x64xf32>
    tpu.vector_store %arg7[%c0_7, %c0_8, %c0_9], %12 {strides = array<i32>} : memref<1x8x64xf32, #tpu.memory_space<vmem>>, vector<1x8x64xf32>,
    %c0_10 = arith.constant 0 : index
    %c0_11 = arith.constant 0 : index
    %13 = vector.load %arg5[%c0_10, %c0_11] : memref<8x12xf32, #tpu.memory_space<vmem>>, vector<8x12xf32>
    %cst_12 = arith.constant dense<0.000000e+00> : vector<8x64xf32>
    %14 = tpu.matmul %13, %8, %cst_12 {dimension_numbers = #tpu.dot_dimension_numbers<[1], [0], [0], [1], [0, 0, 1, 1], [], []>} : vector<8x12xf32>, vector<12x64xf32>, vector<8x64xf32> -> vector<8x64xf32>
    %c0_13 = arith.constant 0 : index
    %c0_14 = arith.constant 0 : index
    %15 = vector.load %arg6[%c0_13, %c0_14] : memref<8x1xf32, #tpu.memory_space<vmem>>, vector<8x1xf32>
    %16 = vector.broadcast %15 : vector<8x1xf32> to vector<8x64xf32>
    %17 = arith.addf %14, %16 : vector<8x64xf32>
    %cst_15 = arith.constant 0.000000e+00 : f32
    %18 = vector.broadcast %cst_15 : f32 to vector<8x64xf32>
    %19 = arith.maximumf %17, %18 : vector<8x64xf32>
    %c0_16 = arith.constant 0 : index
    %c0_17 = arith.constant 0 : index
    %c0_18 = arith.constant 0 : index
    %20 = vector.load %arg8[%c0_16, %c0_17, %c0_18] : memref<1x8x64xf32, #tpu.memory_space<vmem>>, vector<1x8x64xf32>
    %21 = vector.shape_cast %20 : vector<1x8x64xf32> to vector<8x64xf32>
    %22 = vector.shape_cast %19 : vector<8x64xf32> to vector<1x8x64xf32>
    tpu.vector_store %arg8[%c0_16, %c0_17, %c0_18], %22 {strides = array<i32>} : memref<1x8x64xf32, #tpu.memory_space<vmem>>, vector<1x8x64xf32>,
    return
  }
  func.func @transform_0(%arg0: i32, %arg1: i32) -> (i32, i32, i32) {
    %c0_i32 = arith.constant 0 : i32
    %c0_i32_0 = arith.constant 0 : i32
    return %arg0, %c0_i32, %arg1 : i32, i32, i32
  }
  func.func @transform_1(%arg0: i32, %arg1: i32) -> (i32, i32) {
    %c0_i32 = arith.constant 0 : i32
    %c0_i32_0 = arith.constant 0 : i32
    %c0_i32_1 = arith.constant 0 : i32
    return %c0_i32, %c0_i32_0 : i32, i32
  }
  func.func @transform_2(%arg0: i32, %arg1: i32) -> (i32, i32) {
    %c0_i32 = arith.constant 0 : i32
    %c0_i32_0 = arith.constant 0 : i32
    %c0_i32_1 = arith.constant 0 : i32
    return %c0_i32, %c0_i32_0 : i32, i32
  }
  func.func @transform_3(%arg0: i32, %arg1: i32) -> (i32, i32) {
    %c0_i32 = arith.constant 0 : i32
    %c0_i32_0 = arith.constant 0 : i32
    %c0_i32_1 = arith.constant 0 : i32
    return %c0_i32, %c0_i32_0 : i32, i32
  }
  func.func @transform_4(%arg0: i32, %arg1: i32) -> (i32, i32) {
    %c0_i32 = arith.constant 0 : i32
    %c0_i32_0 = arith.constant 0 : i32
    %c0_i32_1 = arith.constant 0 : i32
    return %c0_i32, %c0_i32_0 : i32, i32
  }
  func.func @transform_5(%arg0: i32, %arg1: i32) -> (i32, i32, i32) {
    %c0_i32 = arith.constant 0 : i32
    %c0_i32_0 = arith.constant 0 : i32
    return %arg0, %c0_i32, %arg1 : i32, i32, i32
  }
  func.func @transform_6(%arg0: i32, %arg1: i32) -> (i32, i32, i32) {
    %c0_i32 = arith.constant 0 : i32
    %c0_i32_0 = arith.constant 0 : i32
    return %arg0, %c0_i32, %arg1 : i32, i32, i32
  }
}

</mosaic_0001>

<bundles_post_ra>
// kernel: fdd_forward.1
= control target key start
LH: loop header
LB: loop body
LE: loop exit
PB: predicated region body
PF: predicated region fallthrough
CT: control target
= control target key end

     0   :  { %s747_s21 = smov 0   ;;  %s749_s22 = smov 0   ;;  %s809_s0 = inlined_call_operand.vmem [shape: f32[2,16,64], index: 0, kind: input, shape index: {}]   ;;  %s810_s1 = inlined_call_operand.vmem [shape: f32[12,16], index: 1, kind: input, shape index: {}]   ;;  %s811_s2 = inlined_call_operand.vmem [shape: f32[12,1], index: 2, kind: input, shape index: {}]   ;;  %s812_s3 = inlined_call_operand.vmem [shape: f32[8,12], index: 3, kind: input, shape index: {}]   ;;  %s813_s4 = inlined_call_operand.vmem [shape: f32[8,1], index: 4, kind: input, shape index: {}]   ;;  %s814_s5 = inlined_call_operand.vmem [shape: f32[2,8,64], index: 5, kind: output, shape index: {0}]   ;;  %s815_s6 = inlined_call_operand.vmem [shape: f32[2,8,64], index: 6, kind: output, shape index: {1}]  }
   0x1   :  { %s751_s23 = smov 0  }
   0x2 LB: > { %s29_s24 = sadd.s32 1, %s701_s22  ;;  %p611_p0 = scmp.ge.s32.totalorder %s705_s23, 1  ;;  %s705_s23 = sphi %s751_s23, %s17_s23   ;;  %s701_s22 = sphi %s749_s22, %s817_s22   ;;  %s697_s21 = sphi %s747_s21, %s816_s21  }
   0x3   : > { %p31_p1 = scmp.ge.s32.totalorder %s29_s24, 2  ;;  %p236_p2 = scmp.lt.s32.totalorder %s705_s23, 3 }
   0x5   : > { %s819_s24 = smov (%p31_p1, %s29_s24), 0  ;;  %p237_p3 = pnand %p611_p0, %p236_p2 }
   0x6   : > { %p278_p4 = scmp.lt.s32.totalorder (!%p237_p3), %s697_s21, 1  ;;  %v302_v0 = vld [vmem:[%s810_s1] sm:$0xff] (!%p237_p3)  ;;  %vm316_vm0 = vcmask (!%p237_p3), 130048   ;;  %v707_v1 = vmov (!%p237_p3), 0   ;;  %v305_v3 = vld [vmem:[%s811_s2 + $0x8] sm:$0xf] (!%p237_p3) }
   0x7   : > { %240 = sbr.rel (%p237_p3) target bundleno = 463 (0x1cf), region = 40  ;;  %634 = vmatprep.mubr.msk.f32.mxu0 (!%p237_p3), %vm316_vm0, %v302_v0  ;;  %681 = vset.pattern.permute.xlu0 (!%p237_p3), %v707_v1  ;;  %v304_v2 = vld [vmem:[%s811_s2] sm:$0xff] (!%p237_p3)  ;;  %v303_v7 = vld [vmem:[%s810_s1 + $0x8] sm:$0xf] (!%p237_p3)  ;;  %v708_v8 = vmov (!%p237_p3), 0.0|0.0   ;;  %vm709_vm1 = vmmov (!%p237_p3), 0  }
   0x8   : > { %308 = vperm.xlu0 (!%p237_p3), %681, %v304_v2   ;;  %682 = vset.pattern.permute.xlu1 (!%p237_p3), %v707_v1  ;;  %v710_v9 = vmov (!%p237_p3), 0.0   ;;  %v403_v10 = vld [vmem:[%s813_s4] sm:$0xff] (!%p237_p3)  ;;  %vm413_vm2 = vcmask (!%p237_p3), 1043456   ;;  %vm400_vm3 = vcmask (!%p237_p3), 523264   ;;  %vm711_vm4 = vmmov (!%p237_p3), 1  }
   0x9   : > { %648 = vmatprep.subr.bf16.mxu1 (!%p237_p3), %v708_v8  ;;  %641 = vmatprep.mubr.msk.f32.mxu1 (!%p237_p3), %vm709_vm1, %v710_v9  ;;  %vm650_vm5 = vmpackc.low (!%p237_p3), %vm413_vm2, %vm711_vm4  ;;  %v402_v20 = vld [vmem:[%s812_s3] sm:$0xff] (!%p237_p3)  ;;  %vm409_vm6 = vcmask (!%p237_p3), 97280  }
   0xa   : > { %406 = vperm.xlu1 (!%p237_p3), %682, %v403_v10  }
   0xc   : > { %313 = vperm.xlu0 (!%p237_p3), %681, %v305_v3  }
   0xe   : > { %s821_s21 = smov (!%p278_p4, %s697_s21), 1 }
   0xf   : > { %s622_s7 = sshll.u32 %s821_s21, 4  ;;  %s614_s15 = sshll.u32 %s821_s21, 3 }
  0x10   : > { %s285_s10 = scalar_lea.vmem %s809_s0, %s622_s7  ;;  %s292_s18 = scalar_lea.vmem %s814_s5, %s614_s15 }
  0x11   : > { %v300_v4 = vld [vmem:[%s285_s10] sm:$0xff]  ;;  %v301_v5 = vld [vmem:[%s285_s10 + $0x8] sm:$0xff]  ;;  %s299_s26 = scalar_lea.vmem %s815_s6, %s614_s15 }
  0x12   : > { %v644_v6 = vpack.c.bf16 %v301_v5, %v300_v4 }
  0x14   : > { %645 = vmatprep.subr.bf16.mxu0 %v644_v6 }
  0x15   : > { %647 = vmatpush3.bf16.msra.mxu0 %v644_v6 }
  0x18   : > { %635 = vmatmul.mubr.msk.f32.vlgmr.msra.gmra.mrb[0].mxu0 %vm316_vm0, %v303_v7 }
  0x87   : > { %v309_v11 = vpop.permute.xlu0 %308 }
  0x89   : > { %v407_v21 = vpop.permute.xlu1 %406 }
  0x8b   : > { %v314_v12 = vpop.permute.xlu0 %313 }
  0xeb   : > { %v636_v13 = vpop.f32.mrb[0].mxu0 }
  0xec   : > { %v395_v14 = vadd.f32 %v636_v13, %v314_v12  ;;  %v389_v15 = vpop.f32.mrb[1].mxu0 }
  0xed   : > { %v390_v16 = vadd.f32 %v389_v15, %v309_v11 }
  0xee   : > { %v399_v17 = vmax.f32 %v395_v14, 0.0 }
  0xef   : > { %v398_v18 = vmax.f32 %v390_v16, 0.0 }
  0xf1   : > { %401 = vst.msk [vmem:[%s292_s18] sm:$0xff] %vm400_vm3, %v398_v18  ;;  %v649_v19 = vpack.c.bf16 %v399_v17, %v398_v18 }
  0xf3   : > { %651 = vmatpush3.bf16.msk.msra.mxu1 %vm650_vm5, %v649_v19 }
  0xf6   : > { %642 = vmatmul.mubr.msk.f32.vlgmr.msra.gmra.mrb[0].mxu1 %vm409_vm6, %v402_v20 }
 0x1c9   : > { %v483_v22 = vpop.f32.mrb[0].mxu1 }
 0x1ca   : > { %v484_v23 = vadd.f32 %v483_v22, %v407_v21  ;;  %v643_v24 = vpop.f32.mrb[1].mxu1 }
 0x1cc   : > { %v487_v25 = vmax.f32 %v484_v23, 0.0 }
 0x1ce   : > { %488 = vst.msk [vmem:[%s299_s26] sm:$0xff] %vm400_vm3, %v487_v25 }
 0x1cf PF: > { %s17_s23 = sadd.s32 1, %s705_s23   ;;  %s816_s21 = smov %s701_s22 }
 0x1d0   : > { %p14_p5 = scmp.ge.s32.totalorder %s17_s23, 4   ;;  %s817_s22 = smov %s819_s24 }
 0x1d2   :  { %16 = sbr.rel (!%p14_p5) target bundleno = 2 (0x2), region = 82 }

</bundles_post_ra>
